<compile_context>
chip_gen: v5e
topology: v5e:2x2
jax: 0.10.0
libtpu: 0.0.40
codegen_flags: <defaults>
</compile_context>

<pallas_src>
import jax
import jax.numpy as jnp
from jax.experimental import pallas as pl
from jax.experimental.pallas import tpu as pltpu

_LANES = 512            # lane-dense last dim (multiple of 128) -> unmasked full-width vst
_TILE_ROWS = 2048       # (2048, 512) f32 = 4 MiB/block: v6e roofline plateau.
                        # v7x callers can pass tile_rows=4096 (8 MiB) -- still inside
                        # the 40 MiB vmem limit below -- to amortize per-step overhead.
_MIN_BLOCK_ROWS = 512   # never let ragged handling shrink blocks below ~1 MiB
_SMALL_N = 1 << 17      # ~512 KiB f32 of work: below this, plain JAX wins (launch cost)


def _linreg_kernel(w_ref, b_ref, x_ref, o_ref):
    # w_ref / b_ref: (1,) scalars in SMEM.  x_ref / o_ref: (block_rows, 512) VMEM tiles.
    o_ref[...] = (w_ref[0] * x_ref[...] + b_ref[0]).astype(o_ref.dtype)


def _sublane_multiple(dtype) -> int:
    # f32 -> 8, bf16 -> 16, int8/fp8 -> 32 (sub-32-bit dtypes pack along sublanes).
    return 8 * max(1, 4 // jnp.dtype(dtype).itemsize)


def _pick_block_rows(rows: int, tile_rows: int, dtype) -> int:
    """Row-block size: big enough to sit at the HBM roofline, small enough that
    the grid has >= 2 steps (both v7x TensorCores get work under "parallel"),
    and never shrunk to handle raggedness (the cdiv grid + Pallas's masked
    last-block writeback handles that)."""
    if rows <= _MIN_BLOCK_ROWS:
        return rows                          # full extent: always a legal block shape
    sub = _sublane_multiple(dtype)
    half = pl.cdiv(rows, 2)
    half = pl.cdiv(half, sub) * sub          # round up to the sublane multiple
    br = min(tile_rows, max(_MIN_BLOCK_ROWS, half))
    return rows if br >= rows else br


def _linreg_pallas_2d(x2d: jax.Array, weight: jax.Array, bias: jax.Array,
                      tile_rows: int) -> jax.Array:
    rows = x2d.shape[0]
    block_rows = _pick_block_rows(rows, tile_rows, x2d.dtype)
    grid = (pl.cdiv(rows, block_rows),)      # ragged final block -> masked writeback
    return pl.pallas_call(
        _linreg_kernel,
        out_shape=jax.ShapeDtypeStruct((rows, _LANES), x2d.dtype),
        grid=grid,
        in_specs=[
            pl.BlockSpec(memory_space=pltpu.MemorySpace.SMEM),   # weight (1,)
            pl.BlockSpec(memory_space=pltpu.MemorySpace.SMEM),   # bias   (1,)
            # (v7x option: pipeline_mode=pl.Buffered(3) here hides DMA-arrival
            #  jitter when two TCs share HBM queues; default 2-deep kept.)
            pl.BlockSpec((block_rows, _LANES), lambda i: (i, 0)),
        ],
        out_specs=pl.BlockSpec((block_rows, _LANES), lambda i: (i, 0)),
        compiler_params=pltpu.CompilerParams(
            dimension_semantics=("parallel",),   # shard row tiles across TCs (v7x)
            vmem_limit_bytes=40 << 20,           # covers 8 MiB blocks; > v5e's 16 MiB default
        ),
    )(weight, bias, x2d)


def linear_regression_forward(
    x: jax.Array,
    weight: jax.Array,
    bias: jax.Array,
    *,
    tile_rows: int = _TILE_ROWS,
    min_kernel_elems: int = _SMALL_N,
) -> jax.Array:
    """y = weight * x + bias.  Lane-dense tiled Pallas kernel for large inputs,
    plain JAX for small ones; no full-tensor pad / slice passes around the call."""
    assert weight.shape == (1,) and bias.shape == (1,)
    orig_shape = x.shape
    n = int(x.size)

    # Small-input bypass: the fixed pallas_call launch / DMA-setup cost dwarfs
    # the 2 FMAs per vreg, and XLA fuses this elementwise op with its neighbors.
    if n < min_kernel_elems or n < _LANES:
        return (weight * x + bias).astype(x.dtype)

    flat = x.reshape(-1)                     # free (row-major view)
    main = (n // _LANES) * _LANES
    rows = main // _LANES

    if main == n:
        # Lane-aligned fast path: reshape views only -> zero extra HBM passes.
        x2d = flat.reshape(rows, _LANES)
        return _linreg_pallas_2d(x2d, weight, bias, tile_rows).reshape(orig_shape)

    # Ragged path: kernel on the aligned prefix; the sub-512-element tail is
    # plain JAX.  One concat pass over the output instead of the old pad+slice.
    x2d = flat[:main].reshape(rows, _LANES)
    y_main = _linreg_pallas_2d(x2d, weight, bias, tile_rows).reshape(-1)
    y_tail = (weight * flat[main:] + bias).astype(x.dtype)
    return jnp.concatenate([y_main, y_tail]).reshape(orig_shape)


if __name__ == "__main__":
    key = jax.random.PRNGKey(0)
    k_w, k_b, k_x = jax.random.split(key, 3)

    # Parameters as in nn.Parameter(torch.randn(1)).
    weight = jax.random.normal(k_w, (1,), dtype=jnp.float32)
    bias = jax.random.normal(k_b, (1,), dtype=jnp.float32)

    # 1) Small (300, 1) input: takes the plain-JAX bypass (kernel would cost more
    #    in launch/DMA setup than the FMAs are worth).
    x_small = jax.random.normal(k_x, (300, 1), dtype=jnp.float32)
    y_small = jax.block_until_ready(linear_regression_forward(x_small, weight, bias))
    assert y_small.shape == x_small.shape
    assert jnp.allclose(y_small, weight * x_small + bias, atol=1e-6), "bypass mismatch"

    # 2) Kernel path, lane-aligned (n % 512 == 0): zero-copy reshape in/out,
    #    single lane-dense block.  Forced through the kernel with min_kernel_elems=0.
    x_aligned = jax.random.normal(k_x, (4096, 1), dtype=jnp.float32)
    y_aligned = jax.block_until_ready(
        linear_regression_forward(x_aligned, weight, bias, min_kernel_elems=0))
    assert y_aligned.shape == x_aligned.shape
    assert jnp.allclose(y_aligned, weight * x_aligned + bias, atol=1e-6), "aligned mismatch"

    # 3) Kernel path, ragged: 585 aligned rows -> 2 grid steps (second block ragged,
    #    masked writeback) plus a 480-element plain-JAX tail.  Blocks stay >= 1 MiB.
    x_ragged = jax.random.normal(k_x, (300_000, 1), dtype=jnp.float32)
    y_ragged = jax.block_until_ready(
        linear_regression_forward(x_ragged, weight, bias, min_kernel_elems=0))
    assert y_ragged.shape == x_ragged.shape
    assert jnp.allclose(y_ragged, weight * x_ragged + bias, atol=1e-6), "ragged mismatch"

    print("KERNEL_OK")
</pallas_src>

<mosaic_0001>
module attributes {stable_mosaic.version = 11 : i64} {
  func.func @_linreg_kernel(%arg0: i32, %arg1: memref<1xf32, #tpu.memory_space<smem>>, %arg2: memref<1xf32, #tpu.memory_space<smem>>, %arg3: memref<8x512xf32, #tpu.memory_space<vmem>>, %arg4: memref<8x512xf32, #tpu.memory_space<vmem>>) attributes {dimension_semantics = [#tpu.dimension_semantics<parallel>], iteration_bounds = array<i64: 1>, scalar_prefetch = 0 : i64, scratch_operands = 0 : i64, tpu.core_type = #tpu.core_type<tc>, window_params = [{transform_indices = @transform_0, window_bounds = array<i64: 1>}, {transform_indices = @transform_1, window_bounds = array<i64: 1>}, {transform_indices = @transform_2, window_bounds = array<i64: 8, 512>}, {transform_indices = @transform_3, window_bounds = array<i64: 8, 512>}]} {
    %c0 = arith.constant 0 : index
    %0 = memref.load %arg1[%c0] : memref<1xf32, #tpu.memory_space<smem>>
    %c0_0 = arith.constant 0 : index
    %c0_1 = arith.constant 0 : index
    %1 = vector.load %arg3[%c0_0, %c0_1] : memref<8x512xf32, #tpu.memory_space<vmem>>, vector<8x512xf32>
    %2 = vector.broadcast %0 : f32 to vector<8x512xf32>
    %3 = arith.mulf %2, %1 : vector<8x512xf32>
    %c0_2 = arith.constant 0 : index
    %4 = memref.load %arg2[%c0_2] : memref<1xf32, #tpu.memory_space<smem>>
    %5 = vector.broadcast %4 : f32 to vector<8x512xf32>
    %6 = arith.addf %3, %5 : vector<8x512xf32>
    %c0_3 = arith.constant 0 : index
    %c0_4 = arith.constant 0 : index
    %7 = vector.load %arg4[%c0_3, %c0_4] : memref<8x512xf32, #tpu.memory_space<vmem>>, vector<8x512xf32>
    tpu.vector_store %arg4[%c0_3, %c0_4], %6 {strides = array<i32>} : memref<8x512xf32, #tpu.memory_space<vmem>>, vector<8x512xf32>,
    return
  }
  func.func @transform_0(%arg0: i32) -> i32 {
    %c0_i32 = arith.constant 0 : i32
    %c0_i32_0 = arith.constant 0 : i32
    return %c0_i32 : i32
  }
  func.func @transform_1(%arg0: i32) -> i32 {
    %c0_i32 = arith.constant 0 : i32
    %c0_i32_0 = arith.constant 0 : i32
    return %c0_i32 : i32
  }
  func.func @transform_2(%arg0: i32) -> (i32, i32) {
    %c0_i32 = arith.constant 0 : i32
    %c0_i32_0 = arith.constant 0 : i32
    return %arg0, %c0_i32 : i32, i32
  }
  func.func @transform_3(%arg0: i32) -> (i32, i32) {
    %c0_i32 = arith.constant 0 : i32
    %c0_i32_0 = arith.constant 0 : i32
    return %arg0, %c0_i32 : i32, i32
  }
}

</mosaic_0001>

<bundles_post_ra>
// kernel: tpu_custom_call.1
= control target key start
LH: loop header
LB: loop body
LE: loop exit
PB: predicated region body
PF: predicated region fallthrough
CT: control target
= control target key end

     0   :  { %10 = vsyncpa [#allocation5], 0  ;;  %s156_s0 = inlined_call_operand.<no memory space> [shape: f32[1], index: 0, kind: input, shape index: {}]   ;;  %s157_s1 = inlined_call_operand.<no memory space> [shape: f32[1], index: 1, kind: input, shape index: {}]   ;;  %s158_s2 = inlined_call_operand.hbm [shape: f32[8,512], index: 2, kind: input, shape index: {}]   ;;  %s159_s3 = inlined_call_operand.hbm [shape: f32[8,512], index: 3, kind: output, shape index: {}]  }
   0x1   :  { %11 = vsyncpa [#allocation6], 0  ;;  %s21_s14 = sshll.u32 %s158_s2, 4  ;;  %s122_s15 = smov [#allocation4]   ;;  %s22_s14 = int_to_ptr.hbm [resolvable:$true] %s21_s14 }
   0x2   :  { %s23_s16 = sshll.u32 %s122_s15, 4  ;;  %s24_s16 = int_to_ptr.vmem [resolvable:$true] %s23_s16 }
   0x3   :  { %26 = dma.hbm_to_vmem [thread:$0]  %s22_s14, 512, %s24_s16, [#allocation5]  }
   0x4   :  { %118 = dma.done.wait [#allocation5], 512  }
   0x5   :  { %119 = vsyncadd [#allocation5], 4294966784  ;;  %v36_v0 = vstv %s156_s0  ;;  %v32_v1 = vld [vmem:[#allocation4] sm:$0xff]  ;;  %v42_v2 = vstv %s157_s1  ;;  %v33_v3 = vld [vmem:[#allocation4 + $0x8] sm:$0xff]  ;;  %s123_s2 = smov [#allocation7]   ;;  %s58_s0 = sshll.u32 %s159_s3, 4  ;;  %s59_s0 = int_to_ptr.hbm [resolvable:$true] %s58_s0 }
   0x6   :  { %v34_v4 = vld [vmem:[#allocation4 + $0x10] sm:$0xff]  ;;  %v37_v5 = vmul.f32 %v36_v0, %v32_v1  ;;  %v38_v6 = vmul.f32 %v36_v0, %v33_v3  ;;  %v35_v8 = vld [vmem:[#allocation4 + $0x18] sm:$0xff]  ;;  %s56_s21 = sshll.u32 %s123_s2, 4  ;;  %s57_s21 = int_to_ptr.vmem [resolvable:$true] %s56_s21 }
   0x7   :  { %v39_v7 = vmul.f32 %v36_v0, %v34_v4  ;;  %v40_v9 = vmul.f32 %v36_v0, %v35_v8 }
   0x8   :  { %v43_v10 = vadd.f32 %v42_v2, %v37_v5  ;;  %v44_v11 = vadd.f32 %v42_v2, %v38_v6 }
   0x9   :  { %v45_v12 = vadd.f32 %v42_v2, %v39_v7  ;;  %v46_v13 = vadd.f32 %v42_v2, %v40_v9 }
   0xa   :  { %47 = vst [vmem:[#allocation7] sm:$0xff] %v43_v10 }
   0xb   :  { %48 = vst [vmem:[#allocation7 + $0x8] sm:$0xff] %v44_v11 }
   0xc   :  { %49 = vst [vmem:[#allocation7 + $0x10] sm:$0xff] %v45_v12 }
   0xd   :  { %50 = vst [vmem:[#allocation7 + $0x18] sm:$0xff] %v46_v13 }
   0xe   :  { %61 = dma.vmem_to_hbm [thread:$0]  %s57_s21, 512, %s59_s0, [#allocation6]  }
   0xf   :  { %120 = dma.done.wait [#allocation6], 512  }
  0x10   :  { %121 = vsyncadd [#allocation6], 4294966784 }
  0x11   :  { %66 = vsyncpa [#allocation5], 1 }
  0x12   :  { %67 = vsyncpa [#allocation6], 1 }

</bundles_post_ra>
